<compile_context>
chip_gen: v5e
topology: v5e:2x2
jax: 0.10.0
libtpu: 0.0.40
codegen_flags: <defaults>
</compile_context>

<pallas_src>
import jax
import jax.numpy as jnp
from jax.experimental import pallas as pl
from jax.experimental.pallas import tpu as pltpu

LANE = 128      # lane width: padded hidden / padded fc3 width
TB_MAX = 1024   # max batch tile (sweepable 512-2048)
HIDDEN = 24


def dqn_kernel(x_ref, w1_ref, b1_ref, w2_ref, b2_ref, w3_ref, b3_ref, o_ref):
    # fc1 + relu (bf16 MXU, f32 accumulate; padded hidden lanes stay exactly 0)
    xb = x_ref[...].astype(jnp.bfloat16)
    h1 = jnp.dot(xb, w1_ref[...], preferred_element_type=jnp.float32) + b1_ref[...]
    h1 = jnp.maximum(h1, 0.0)
    # fc2 + relu
    h2 = jnp.dot(h1.astype(jnp.bfloat16), w2_ref[...],
                 preferred_element_type=jnp.float32) + b2_ref[...]
    h2 = jnp.maximum(h2, 0.0)
    # fc3 (no activation)
    y = jnp.dot(h2.astype(jnp.bfloat16), w3_ref[...],
                preferred_element_type=jnp.float32) + b3_ref[...]
    # narrow store: only the real action columns go back to HBM (16 B/row,
    # not 512 B/row) -- this was the dominant HBM-traffic term before.
    o_ref[...] = y[:, : o_ref.shape[-1]]


def _pad_to(a, shape):
    return jnp.pad(a, [(0, t - s) for s, t in zip(a.shape, shape)])


def pad_params(p, state_size, weight_dtype=jnp.bfloat16):
    """Zero-pad every layer's width to LANE; weights -> bf16, biases stay f32."""
    assert p["w1"].shape[1] <= LANE and p["w3"].shape[1] <= LANE
    HP = LANE
    return {
        "w1": _pad_to(p["w1"], (state_size, HP)).astype(weight_dtype),
        "b1": _pad_to(p["b1"], (1, HP)),
        "w2": _pad_to(p["w2"], (HP, HP)).astype(weight_dtype),
        "b2": _pad_to(p["b2"], (1, HP)),
        "w3": _pad_to(p["w3"], (HP, HP)).astype(weight_dtype),
        "b3": _pad_to(p["b3"], (1, HP)),
    }


def _pick_batch_tile(B, tb_max=TB_MAX):
    if B <= 8:
        return B  # single block equal to the full batch dim (always legal)
    # >= 2 grid steps once there is real work, so the "parallel" batch axis
    # can be split across v7x's two TensorCores; capped to bound VMEM.
    half = pl.cdiv(B, 2)
    return min(tb_max, pl.cdiv(half, 8) * 8)


def dqn_forward(x, padded, action_size):
    """x: [B, state_size] (f32 or bf16) -> Q-values [B, action_size] f32."""
    B, S = x.shape
    HP = padded["w1"].shape[1]
    TB = _pick_batch_tile(B)
    grid = (pl.cdiv(B, TB),)

    return pl.pallas_call(
        dqn_kernel,
        out_shape=jax.ShapeDtypeStruct((B, action_size), jnp.float32),
        grid=grid,
        in_specs=[
            # batch-tiled activations: double-buffered over the grid. The last
            # (partial) block may read past B; those rows' outputs are dropped
            # by the masked write of the partial output block.
            pl.BlockSpec((TB, S), lambda i: (i, 0)),
            # weights & biases: constant block index -> fetched once, resident.
            # (Not marking them pl.Buffered(1): the ~130 KiB saved is negligible.)
            pl.BlockSpec((S, HP), lambda i: (0, 0)),
            pl.BlockSpec((1, HP), lambda i: (0, 0)),
            pl.BlockSpec((HP, HP), lambda i: (0, 0)),
            pl.BlockSpec((1, HP), lambda i: (0, 0)),
            pl.BlockSpec((HP, HP), lambda i: (0, 0)),
            pl.BlockSpec((1, HP), lambda i: (0, 0)),
        ],
        out_specs=pl.BlockSpec((TB, action_size), lambda i: (i, 0)),
        compiler_params=pltpu.CompilerParams(
            dimension_semantics=("parallel",)),
    )(x, padded["w1"], padded["b1"], padded["w2"], padded["b2"],
      padded["w3"], padded["b3"])


def init_params(key, state_size, action_size, hidden=HIDDEN):
    """Deterministic PyTorch-Linear-style (uniform 1/sqrt(fan_in)) init, unpadded."""
    ks = jax.random.split(key, 6)

    def linear(kw, kb, fan_in, fan_out):
        bound = 1.0 / jnp.sqrt(jnp.float32(fan_in))
        w = jax.random.uniform(kw, (fan_in, fan_out), jnp.float32, -bound, bound)
        b = jax.random.uniform(kb, (1, fan_out), jnp.float32, -bound, bound)
        return w, b

    w1, b1 = linear(ks[0], ks[1], state_size, hidden)
    w2, b2 = linear(ks[2], ks[3], hidden, hidden)
    w3, b3 = linear(ks[4], ks[5], hidden, action_size)
    return {"w1": w1, "b1": b1, "w2": w2, "b2": b2, "w3": w3, "b3": b3}


def dqn_reference(x, p):
    """Pure-f32 reference matching the PyTorch module."""
    h1 = jnp.maximum(x @ p["w1"] + p["b1"], 0.0)
    h2 = jnp.maximum(h1 @ p["w2"] + p["b2"], 0.0)
    return h2 @ p["w3"] + p["b3"]


def dqn_reference_quantized(x, padded, action_size):
    """Reference reproducing the kernel's bf16-weight / f32-accumulate math."""
    f32, bf = jnp.float32, jnp.bfloat16
    w1 = padded["w1"].astype(f32)
    w2 = padded["w2"].astype(f32)
    w3 = padded["w3"].astype(f32)
    xb = x.astype(bf).astype(f32)
    h1 = jnp.maximum(xb @ w1 + padded["b1"], 0.0)
    h2 = jnp.maximum(h1.astype(bf).astype(f32) @ w2 + padded["b2"], 0.0)
    y = h2.astype(bf).astype(f32) @ w3 + padded["b3"]
    return y[:, :action_size]


if __name__ == "__main__":
    key = jax.random.PRNGKey(0)
    k_x, k_x2, k_p = jax.random.split(key, 3)

    state_size = 8     # small observation vector
    action_size = 4    # 4 discrete actions

    params = init_params(k_p, state_size, action_size)
    padded = pad_params(params, state_size)

    # small inference-style batch (single grid step)
    x_small = jax.random.normal(k_x, (2, state_size), jnp.float32)
    out_small = jax.block_until_ready(dqn_forward(x_small, padded, action_size))
    assert out_small.shape == (2, action_size), out_small.shape
    ref_small = dqn_reference_quantized(x_small, padded, action_size)
    assert jnp.allclose(out_small, ref_small, atol=1e-4, rtol=1e-4)

    # larger batch exercising the pipelined multi-step grid + partial blocks
    x_big = jax.random.normal(k_x2, (300, state_size), jnp.float32)
    out_big = jax.block_until_ready(dqn_forward(x_big, padded, action_size))
    assert out_big.shape == (300, action_size), out_big.shape
    ref_big = dqn_reference_quantized(x_big, padded, action_size)
    assert jnp.allclose(out_big, ref_big, atol=1e-4, rtol=1e-4)

    # sanity vs the exact f32 module math (only bf16 weight/input rounding)
    f32_ref = dqn_reference(x_big, params)
    assert float(jnp.max(jnp.abs(out_big - f32_ref))) < 5e-2

    print("KERNEL_OK")
</pallas_src>

<mosaic_0001>
module attributes {stable_mosaic.version = 11 : i64} {
  func.func @dqn_kernel(%arg0: i32, %arg1: memref<2x8xf32, #tpu.memory_space<vmem>>, %arg2: memref<8x128xbf16, #tpu.memory_space<vmem>>, %arg3: memref<1x128xf32, #tpu.memory_space<vmem>>, %arg4: memref<128x128xbf16, #tpu.memory_space<vmem>>, %arg5: memref<1x128xf32, #tpu.memory_space<vmem>>, %arg6: memref<128x128xbf16, #tpu.memory_space<vmem>>, %arg7: memref<1x128xf32, #tpu.memory_space<vmem>>, %arg8: memref<2x4xf32, #tpu.memory_space<vmem>>) attributes {dimension_semantics = [#tpu.dimension_semantics<parallel>], iteration_bounds = array<i64: 1>, scalar_prefetch = 0 : i64, scratch_operands = 0 : i64, tpu.core_type = #tpu.core_type<tc>, window_params = [{transform_indices = @transform_0, window_bounds = array<i64: 2, 8>}, {pipeline_mode = #tpu.pipeline_mode<synchronous>, transform_indices = @transform_1, window_bounds = array<i64: 8, 128>}, {pipeline_mode = #tpu.pipeline_mode<synchronous>, transform_indices = @transform_2, window_bounds = array<i64: 1, 128>}, {pipeline_mode = #tpu.pipeline_mode<synchronous>, transform_indices = @transform_3, window_bounds = array<i64: 128, 128>}, {pipeline_mode = #tpu.pipeline_mode<synchronous>, transform_indices = @transform_4, window_bounds = array<i64: 1, 128>}, {pipeline_mode = #tpu.pipeline_mode<synchronous>, transform_indices = @transform_5, window_bounds = array<i64: 128, 128>}, {pipeline_mode = #tpu.pipeline_mode<synchronous>, transform_indices = @transform_6, window_bounds = array<i64: 1, 128>}, {transform_indices = @transform_7, window_bounds = array<i64: 2, 4>}]} {
    %c0 = arith.constant 0 : index
    %c0_0 = arith.constant 0 : index
    %0 = vector.load %arg1[%c0, %c0_0] : memref<2x8xf32, #tpu.memory_space<vmem>>, vector<2x8xf32>
    %1 = arith.truncf %0 : vector<2x8xf32> to vector<2x8xbf16>
    %c0_1 = arith.constant 0 : index
    %c0_2 = arith.constant 0 : index
    %2 = vector.load %arg2[%c0_1, %c0_2] : memref<8x128xbf16, #tpu.memory_space<vmem>>, vector<8x128xbf16>
    %cst = arith.constant dense<0.000000e+00> : vector<2x128xf32>
    %3 = tpu.matmul %1, %2, %cst {dimension_numbers = #tpu.dot_dimension_numbers<[1], [0], [0], [1], [0, 0, 1, 1], [], []>} : vector<2x8xbf16>, vector<8x128xbf16>, vector<2x128xf32> -> vector<2x128xf32>
    %c0_3 = arith.constant 0 : index
    %c0_4 = arith.constant 0 : index
    %4 = vector.load %arg3[%c0_3, %c0_4] : memref<1x128xf32, #tpu.memory_space<vmem>>, vector<1x128xf32>
    %5 = vector.broadcast %4 : vector<1x128xf32> to vector<2x128xf32>
    %6 = arith.addf %3, %5 : vector<2x128xf32>
    %cst_5 = arith.constant 0.000000e+00 : f32
    %7 = vector.broadcast %cst_5 : f32 to vector<2x128xf32>
    %8 = arith.maximumf %6, %7 : vector<2x128xf32>
    %9 = arith.truncf %8 : vector<2x128xf32> to vector<2x128xbf16>
    %c0_6 = arith.constant 0 : index
    %c0_7 = arith.constant 0 : index
    %10 = vector.load %arg4[%c0_6, %c0_7] : memref<128x128xbf16, #tpu.memory_space<vmem>>, vector<128x128xbf16>
    %cst_8 = arith.constant dense<0.000000e+00> : vector<2x128xf32>
    %11 = tpu.matmul %9, %10, %cst_8 {dimension_numbers = #tpu.dot_dimension_numbers<[1], [0], [0], [1], [0, 0, 1, 1], [], []>} : vector<2x128xbf16>, vector<128x128xbf16>, vector<2x128xf32> -> vector<2x128xf32>
    %c0_9 = arith.constant 0 : index
    %c0_10 = arith.constant 0 : index
    %12 = vector.load %arg5[%c0_9, %c0_10] : memref<1x128xf32, #tpu.memory_space<vmem>>, vector<1x128xf32>
    %13 = vector.broadcast %12 : vector<1x128xf32> to vector<2x128xf32>
    %14 = arith.addf %11, %13 : vector<2x128xf32>
    %cst_11 = arith.constant 0.000000e+00 : f32
    %15 = vector.broadcast %cst_11 : f32 to vector<2x128xf32>
    %16 = arith.maximumf %14, %15 : vector<2x128xf32>
    %17 = arith.truncf %16 : vector<2x128xf32> to vector<2x128xbf16>
    %c0_12 = arith.constant 0 : index
    %c0_13 = arith.constant 0 : index
    %18 = vector.load %arg6[%c0_12, %c0_13] : memref<128x128xbf16, #tpu.memory_space<vmem>>, vector<128x128xbf16>
    %cst_14 = arith.constant dense<0.000000e+00> : vector<2x128xf32>
    %19 = tpu.matmul %17, %18, %cst_14 {dimension_numbers = #tpu.dot_dimension_numbers<[1], [0], [0], [1], [0, 0, 1, 1], [], []>} : vector<2x128xbf16>, vector<128x128xbf16>, vector<2x128xf32> -> vector<2x128xf32>
    %c0_15 = arith.constant 0 : index
    %c0_16 = arith.constant 0 : index
    %20 = vector.load %arg7[%c0_15, %c0_16] : memref<1x128xf32, #tpu.memory_space<vmem>>, vector<1x128xf32>
    %21 = vector.broadcast %20 : vector<1x128xf32> to vector<2x128xf32>
    %22 = arith.addf %19, %21 : vector<2x128xf32>
    %23 = vector.extract_strided_slice %22 {offsets = [0, 0], sizes = [2, 4], strides = [1, 1]} : vector<2x128xf32> to vector<2x4xf32>
    %c0_17 = arith.constant 0 : index
    %c0_18 = arith.constant 0 : index
    %24 = vector.load %arg8[%c0_17, %c0_18] : memref<2x4xf32, #tpu.memory_space<vmem>>, vector<2x4xf32>
    tpu.vector_store %arg8[%c0_17, %c0_18], %23 {strides = array<i32>} : memref<2x4xf32, #tpu.memory_space<vmem>>, vector<2x4xf32>,
    return
  }
  func.func @transform_0(%arg0: i32) -> (i32, i32) {
    %c0_i32 = arith.constant 0 : i32
    %c0_i32_0 = arith.constant 0 : i32
    return %arg0, %c0_i32 : i32, i32
  }
  func.func @transform_1(%arg0: i32) -> (i32, i32) {
    %c0_i32 = arith.constant 0 : i32
    %c0_i32_0 = arith.constant 0 : i32
    %c0_i32_1 = arith.constant 0 : i32
    return %c0_i32, %c0_i32_0 : i32, i32
  }
  func.func @transform_2(%arg0: i32) -> (i32, i32) {
    %c0_i32 = arith.constant 0 : i32
    %c0_i32_0 = arith.constant 0 : i32
    %c0_i32_1 = arith.constant 0 : i32
    return %c0_i32, %c0_i32_0 : i32, i32
  }
  func.func @transform_3(%arg0: i32) -> (i32, i32) {
    %c0_i32 = arith.constant 0 : i32
    %c0_i32_0 = arith.constant 0 : i32
    %c0_i32_1 = arith.constant 0 : i32
    return %c0_i32, %c0_i32_0 : i32, i32
  }
  func.func @transform_4(%arg0: i32) -> (i32, i32) {
    %c0_i32 = arith.constant 0 : i32
    %c0_i32_0 = arith.constant 0 : i32
    %c0_i32_1 = arith.constant 0 : i32
    return %c0_i32, %c0_i32_0 : i32, i32
  }
  func.func @transform_5(%arg0: i32) -> (i32, i32) {
    %c0_i32 = arith.constant 0 : i32
    %c0_i32_0 = arith.constant 0 : i32
    %c0_i32_1 = arith.constant 0 : i32
    return %c0_i32, %c0_i32_0 : i32, i32
  }
  func.func @transform_6(%arg0: i32) -> (i32, i32) {
    %c0_i32 = arith.constant 0 : i32
    %c0_i32_0 = arith.constant 0 : i32
    %c0_i32_1 = arith.constant 0 : i32
    return %c0_i32, %c0_i32_0 : i32, i32
  }
  func.func @transform_7(%arg0: i32) -> (i32, i32) {
    %c0_i32 = arith.constant 0 : i32
    %c0_i32_0 = arith.constant 0 : i32
    return %arg0, %c0_i32 : i32, i32
  }
}

</mosaic_0001>

<bundles_post_ra>
// kernel: tpu_custom_call.1
= control target key start
LH: loop header
LB: loop body
LE: loop exit
PB: predicated region body
PF: predicated region fallthrough
CT: control target
= control target key end

     0   :  { %12 = vsyncpa [#allocation3], 0  ;;  %s592_s0 = inlined_call_operand.hbm [shape: f32[2,8], index: 0, kind: input, shape index: {}]   ;;  %s593_s1 = inlined_call_operand.hbm [shape: bf16[8,128], index: 1, kind: input, shape index: {}]   ;;  %s594_s2 = inlined_call_operand.vmem [shape: f32[1,128], index: 2, kind: input, shape index: {}]   ;;  %s595_s3 = inlined_call_operand.hbm [shape: bf16[128,128], index: 3, kind: input, shape index: {}]   ;;  %s596_s4 = inlined_call_operand.vmem [shape: f32[1,128], index: 4, kind: input, shape index: {}]   ;;  %s597_s5 = inlined_call_operand.hbm [shape: bf16[128,128], index: 5, kind: input, shape index: {}]   ;;  %s598_s6 = inlined_call_operand.vmem [shape: f32[1,128], index: 6, kind: input, shape index: {}]   ;;  %s599_s7 = inlined_call_operand.hbm [shape: f32[2,4], index: 7, kind: output, shape index: {}]  }
   0x1   :  { %13 = vsyncpa [#allocation6], 0 }
   0x2   :  { %14 = vsyncpa [#allocation9], 0  ;;  %s32_s26 = sshll.u32 %s593_s1, 4  ;;  %s33_s26 = int_to_ptr.hbm [resolvable:$true] %s32_s26 }
   0x3   :  { %15 = vsyncpa [#allocation4], 0  ;;  %s521_s27 = smov [#allocation5]   ;;  %s21_s8 = sshll.u32 %s592_s0, 4  ;;  %s22_s8 = int_to_ptr.hbm [resolvable:$true] %s21_s8 }
   0x4   :  { %s34_s28 = sshll.u32 %s521_s27, 4  ;;  %s522_s9 = smov [#allocation2]   ;;  %s35_s28 = int_to_ptr.vmem [resolvable:$true] %s34_s28 }
   0x5   :  { %37 = dma.hbm_to_vmem [thread:$0]  %s33_s26, 64, %s35_s28, [#allocation6]  }
   0x6   :  { %s23_s10 = sshll.u32 %s522_s9, 4  ;;  %s44_s13 = sshll.u32 %s595_s3, 4  ;;  %s24_s10 = int_to_ptr.vmem [resolvable:$true] %s23_s10  ;;  %s45_s13 = int_to_ptr.hbm [resolvable:$true] %s44_s13 }
   0x7   :  { %26 = dma.hbm_to_vmem [thread:$0]  %s22_s8, 32, %s24_s10, [#allocation3]  }
   0x8   :  { %s523_s1 = smov [#allocation7]   ;;  %s59_s17 = sshll.u32 %s597_s5, 4  ;;  %s60_s17 = int_to_ptr.hbm [resolvable:$true] %s59_s17 }
   0x9   :  { %s46_s14 = sshll.u32 %s523_s1, 4  ;;  %s524_s18 = smov 64   ;;  %s47_s14 = int_to_ptr.vmem [resolvable:$true] %s46_s14 }
   0xa   :  { %s525_s0 = smov 4   ;;  %s526_s19 = smov [#allocation8]  }
   0xb   :  { %52 = dma.hbm_to_vmem [thread:$0]  %s45_s13, 1024, %s47_s14, [#allocation6], %s524_s18, %s524_s18, %s525_s0  }
   0xc   :  { %s61_s20 = sshll.u32 %s526_s19, 4  ;;  %s62_s20 = int_to_ptr.vmem [resolvable:$true] %s61_s20 }
   0xd   :  { %67 = dma.hbm_to_vmem [thread:$0]  %s60_s17, 1024, %s62_s20, [#allocation9], %s524_s18, %s524_s18, %s525_s0  }
   0xe   :  { %513 = dma.done.wait [#allocation3], 32  }
   0xf   :  { %514 = vsyncadd [#allocation3], 4294967264 }
  0x10   :  { %515 = dma.done.wait [#allocation6], 1088  }
  0x11   :  { %516 = vsyncadd [#allocation6], 4294966208 }
  0x12   :  { %517 = dma.done.wait [#allocation9], 1024  }
  0x13   :  { %518 = vsyncadd [#allocation9], 4294966272  ;;  %vm98_vm0 = vcmask 1043456   ;;  %v89_v0 = vld [vmem:[#allocation5] sm:$0xf]  ;;  %vm94_vm1 = vcmask 64512  }
  0x14   :  { %v87_v1 = vld [vmem:[#allocation2] sm:$0x3]  ;;  %v100_v3 = vsel %vm98_vm0, %v89_v0, 0  ;;  %v373_v5 = vld [vmem:[#allocation7 + $0x30] sm:$0xff]  ;;  %v372_v6 = vld [vmem:[#allocation7 + $0x28] sm:$0xff]  ;;  %s527_s24 = smov [#allocation10]  }
  0x15   :  { %v374_v2 = vld [vmem:[#allocation7 + $0x38] sm:$0xff]  ;;  %v88_v4 = vpack.c.bf16 %v87_v1, %v87_v1  ;;  %109 = vmatpush.bf16.msra.mxu0 %v100_v3  ;;  %v371_v7 = vld [vmem:[#allocation7 + $0x20] sm:$0xff]  ;;  %v369_v9 = vld [vmem:[#allocation7 + $0x10] sm:$0xff]  ;;  %s288_s25 = sshll.u32 %s527_s24, 4  ;;  %s290_s28 = sshll.u32 %s599_s7, 4  ;;  %vm281_vm2 = vcmask 25600   ;;  %s289_s25 = int_to_ptr.vmem [resolvable:$true] %s288_s25  ;;  %s291_s28 = int_to_ptr.hbm [resolvable:$true] %s290_s28 }
  0x16   :  { %185 = vmatpush.bf16.msra.mxu1 %v374_v2  ;;  %v370_v8 = vld [vmem:[#allocation7 + $0x18] sm:$0xff]  ;;  %v368_v10 = vld [vmem:[#allocation7 + $0x8] sm:$0xff]  ;;  %v367_v11 = vld [vmem:[#allocation7] sm:$0xff] }
  0x17   :  { %v382_v12 = vld [vmem:[#allocation8 + $0x38] sm:$0xff]  ;;  %v381_v13 = vld [vmem:[#allocation8 + $0x30] sm:$0xff]  ;;  %v380_v14 = vld [vmem:[#allocation8 + $0x28] sm:$0xff] }
  0x18   :  { %302 = vmatmul.msk.bf16.vlgmr.msra.gmra.mxu0 %vm94_vm1, %v88_v4  ;;  %268 = vmatpush.bf16.msra.mxu2 %v382_v12  ;;  %v379_v15 = vld [vmem:[#allocation8 + $0x20] sm:$0xff]  ;;  %v378_v16 = vld [vmem:[#allocation8 + $0x18] sm:$0xff]  ;;  %v377_v17 = vld [vmem:[#allocation8 + $0x10] sm:$0xff] }
  0x19   :  { %v390_v18 = vld [vmem:[%s594_s2] ss:$0 sm:$0xff]  ;;  %v376_v24 = vld [vmem:[#allocation8 + $0x8] sm:$0xff]  ;;  %v375_v25 = vld [vmem:[#allocation8] sm:$0xff] }
  0x1a   :  { %186 = vmatpush.bf16.msra.mxu1 %v373_v5  ;;  %v391_v26 = vld [vmem:[%s596_s4] ss:$0 sm:$0xff] }
  0x1b   :  { %v392_v32 = vld [vmem:[%s598_s6] ss:$0 sm:$0xff] }
  0x1c   :  { %269 = vmatpush.bf16.msra.mxu2 %v381_v13 }
  0x1e   :  { %187 = vmatpush.bf16.msra.mxu1 %v372_v6 }
  0x20   :  { %270 = vmatpush.bf16.msra.mxu2 %v380_v14 }
  0x22   :  { %188 = vmatpush.bf16.msra.mxu1 %v371_v7 }
  0x24   :  { %271 = vmatpush.bf16.msra.mxu2 %v379_v15 }
  0x26   :  { %189 = vmatpush.bf16.msra.mxu1 %v370_v8 }
  0x28   :  { %272 = vmatpush.bf16.msra.mxu2 %v378_v16 }
  0x2a   :  { %190 = vmatpush.bf16.msra.mxu1 %v369_v9 }
  0x2c   :  { %273 = vmatpush.bf16.msra.mxu2 %v377_v17 }
  0x2e   :  { %191 = vmatpush.bf16.msra.mxu1 %v368_v10 }
  0x30   :  { %274 = vmatpush.bf16.msra.mxu2 %v376_v24 }
  0x32   :  { %192 = vmatpush.bf16.msra.mxu1 %v367_v11 }
  0x34   :  { %275 = vmatpush.bf16.msra.mxu2 %v375_v25 }
  0x95   :  { %v111_v19 = vpop.f32.mrf.mxu0 }
  0x96   :  { %v112_v20 = vadd.f32 %v390_v18, %v111_v19 }
  0x98   :  { %v115_v21 = vmax.f32 %v112_v20, 0.0 }
  0x9a   :  { %v116_v22 = vpack.c.bf16 %v115_v21, %v115_v21 }
  0x9c   :  { %193 = vmatmul.bf16.vlgmr.msra.gmra.mxu1 %v116_v22 }
  0x9d   :  { %v113_v23 = vpop.f32.mrf.mxu0 }
 0x119   :  { %v194_v27 = vpop.f32.mrf.mxu1 }
 0x11a   :  { %v195_v28 = vadd.f32 %v391_v26, %v194_v27 }
 0x11c   :  { %v198_v29 = vmax.f32 %v195_v28, 0.0 }
 0x11e   :  { %v199_v30 = vpack.c.bf16 %v198_v29, %v198_v29 }
 0x120   :  { %276 = vmatmul.bf16.vlgmr.msra.gmra.mxu2 %v199_v30 }
 0x121   :  { %v196_v31 = vpop.f32.mrf.mxu1 }
 0x1a3   :  { %v277_v33 = vpop.f32.mrf.mxu2 }
 0x1a4   :  { %v278_v34 = vadd.f32 %v392_v32, %v277_v33 }
 0x1a6   :  { %282 = vst.msk [vmem:[#allocation10] sm:$0x3] %vm281_vm2, %v278_v34 }
 0x1a7   :  { %293 = dma.vmem_to_hbm [thread:$0]  %s289_s25, 32, %s291_s28, [#allocation4]  }
 0x1ab   :  { %v279_v35 = vpop.f32.mrf.mxu2 }
 0x1ac   :  { %519 = dma.done.wait [#allocation4], 32  }
 0x1ad   :  { %520 = vsyncadd [#allocation4], 4294967264 }
 0x1ae   :  { %298 = vsyncpa [#allocation3], 1 }
 0x1af   :  { %299 = vsyncpa [#allocation6], 1 }
 0x1b0   :  { %300 = vsyncpa [#allocation9], 1 }
 0x1b1   :  { %301 = vsyncpa [#allocation4], 1 }

</bundles_post_ra>
